<compile_context>
chip_gen: v7x
topology: tpu7x:2x2x1
jax: 0.10.0
libtpu: 0.0.40
codegen_flags: <defaults>
</compile_context>

<pallas_src>
import math

import jax
import jax.numpy as jnp
from jax.experimental import pallas as pl
from jax.experimental.pallas import tpu as pltpu

IN_FEATURES = 64
HIDDEN1 = 128
HIDDEN2 = 64
NUM_CLASSES = 10
PADDED_CLASSES = 128  # lane-dense output width (multiple of 128)


def mlp_kernel(x_ref, w1_ref, b1_ref, w2_ref, b2_ref, w3_ref, b3_ref, o_ref):
    """fc1+relu -> fc2+relu -> fc3(padded N=128) -> log_softmax for one batch tile."""
    mm_dtype = w1_ref.dtype  # bf16 MXU inputs (or f32); accumulation is always f32
    x = x_ref[...].astype(mm_dtype)

    # fc1 + relu (f32 accumulate, f32 elementwise)
    h1 = jnp.dot(x, w1_ref[...], preferred_element_type=jnp.float32) + b1_ref[...]
    h1 = jnp.maximum(h1, 0.0)

    # fc2 + relu
    h2 = jnp.dot(h1.astype(mm_dtype), w2_ref[...],
                 preferred_element_type=jnp.float32) + b2_ref[...]
    h2 = jnp.maximum(h2, 0.0)

    # fc3 — padded to 128 lanes; padded bias columns are -1e30 so they drop out of
    # the max and the sum-exp below.
    logits = jnp.dot(h2.astype(mm_dtype), w3_ref[...],
                     preferred_element_type=jnp.float32) + b3_ref[...]

    # numerically stable log_softmax along the last axis (all f32)
    m = jnp.max(logits, axis=-1, keepdims=True)
    shifted = logits - m
    lse = jnp.log(jnp.sum(jnp.exp(shifted), axis=-1, keepdims=True))
    o_ref[...] = (shifted - lse).astype(o_ref.dtype)


def _round_up(n, m):
    return ((n + m - 1) // m) * m


def _pick_batch_tile(b8, max_batch_tile):
    """Batch tile: >= 2 grid steps whenever possible (v7x megacore), capped by VMEM."""
    if b8 <= 8:
        return 8
    return min(max_batch_tile, _round_up(pl.cdiv(b8, 2), 8))


def simplenet_forward(x, params, *, max_batch_tile=2048,
                      matmul_dtype=jnp.bfloat16, out_dtype=jnp.float32,
                      return_padded=False):
    """x: any shape (B, ...) that flattens to (B, 64).

    Returns (B, 10) log-probs in out_dtype by default (PyTorch-parity path).
    With return_padded=True, returns the raw (b_pad, 128) lane-dense slab so a
    downstream consumer (e.g. NLL gather) can fuse the slice and avoid the extra
    HBM round trip of a materializing [:B, :10] copy.
    """
    B = x.shape[0]
    x_flat = x.reshape(B, -1)
    if x_flat.dtype not in (jnp.float32, jnp.bfloat16):
        x_flat = x_flat.astype(jnp.float32)  # never add a standalone f32->bf16 cast
    assert x_flat.shape[1] == IN_FEATURES, "SimpleNet expects 64 features after flatten"

    w1, b1, w2, b2, w3, b3 = params

    # Lane-dense final layer: pad fc3 out dim 10 -> 128. Zero weight columns plus
    # -1e30 bias columns leave the real-class log-sum-exp numerically unchanged.
    pad_n = PADDED_CLASSES - NUM_CLASSES
    w3p = jnp.pad(w3, ((0, 0), (0, pad_n)))
    b3p = jnp.pad(b3, ((0, 0), (0, pad_n)), constant_values=-1e30)

    # MXU input dtype; biases stay f32 so all elementwise math is f32 (v5e-safe).
    w1m = w1.astype(matmul_dtype)
    w2m = w2.astype(matmul_dtype)
    w3m = w3p.astype(matmul_dtype)
    b1f = b1.astype(jnp.float32)
    b2f = b2.astype(jnp.float32)
    b3f = b3p.astype(jnp.float32)

    # Batch tiling: >= 2 tiles when B > 8 (v7x megacore), tiles up to max_batch_tile.
    b8 = _round_up(B, 8)
    tb = _pick_batch_tile(b8, max_batch_tile)
    b_pad = _round_up(b8, tb)
    if b_pad != B:
        x_flat = jnp.pad(x_flat, ((0, b_pad - B), (0, 0)))
    grid = (b_pad // tb,)

    x_item = x_flat.dtype.itemsize
    out_item = jnp.dtype(out_dtype).itemsize
    weight_bytes = (IN_FEATURES * HIDDEN1 + HIDDEN1 * HIDDEN2
                    + HIDDEN2 * PADDED_CLASSES) * jnp.dtype(matmul_dtype).itemsize
    bias_bytes = (HIDDEN1 + HIDDEN2 + PADDED_CLASSES) * 4

    cost = pl.CostEstimate(
        flops=2 * b_pad * (IN_FEATURES * HIDDEN1 + HIDDEN1 * HIDDEN2
                           + HIDDEN2 * PADDED_CLASSES),
        transcendentals=b_pad * (PADDED_CLASSES + 1),
        bytes_accessed=(b_pad * (IN_FEATURES * x_item + PADDED_CLASSES * out_item)
                        + weight_bytes + bias_bytes),
    )

    # Scoped VMEM: double-buffered x/out tiles + f32 intermediates + resident weights,
    # with 2x headroom; covers v5e's 16 MiB default and stays well under v7x's 64 MiB.
    tile_vmem = (2 * tb * (IN_FEATURES * x_item + PADDED_CLASSES * out_item)
                 + tb * (HIDDEN1 + HIDDEN2 + PADDED_CLASSES) * 4
                 + weight_bytes + bias_bytes)
    vmem_limit = int(min(48 << 20, max(16 << 20, 2 * tile_vmem)))

    const = lambda i: (0, 0)
    out_pad = pl.pallas_call(
        mlp_kernel,
        out_shape=jax.ShapeDtypeStruct((b_pad, PADDED_CLASSES), out_dtype),
        grid=grid,
        in_specs=[
            pl.BlockSpec((tb, IN_FEATURES), lambda i: (i, 0)),       # x: batch-tiled
            pl.BlockSpec((IN_FEATURES, HIDDEN1), const),             # w1 (resident)
            pl.BlockSpec((1, HIDDEN1), const),                       # b1
            pl.BlockSpec((HIDDEN1, HIDDEN2), const),                 # w2
            pl.BlockSpec((1, HIDDEN2), const),                       # b2
            pl.BlockSpec((HIDDEN2, PADDED_CLASSES), const),          # w3 (padded)
            pl.BlockSpec((1, PADDED_CLASSES), const),                # b3 (padded)
        ],
        out_specs=pl.BlockSpec((tb, PADDED_CLASSES), lambda i: (i, 0)),
        compiler_params=pltpu.CompilerParams(
            dimension_semantics=("parallel",),  # megacore-shard batch tiles on v7x
            vmem_limit_bytes=vmem_limit,
        ),
        cost_estimate=cost,
    )(x_flat, w1m, b1f, w2m, b2f, w3m, b3f)

    if return_padded:
        return out_pad  # (b_pad, 128); real classes are [:, :NUM_CLASSES]
    return out_pad[:B, :NUM_CLASSES]


def init_params(key):
    """Deterministic init mimicking torch.nn.Linear defaults:
    weights & biases ~ U(-1/sqrt(fan_in), 1/sqrt(fan_in)).
    Weights stored as (in_features, out_features); biases as (1, out_features)."""
    dims = [(IN_FEATURES, HIDDEN1), (HIDDEN1, HIDDEN2), (HIDDEN2, NUM_CLASSES)]
    params = []
    keys = jax.random.split(key, 2 * len(dims))
    for i, (fan_in, fan_out) in enumerate(dims):
        bound = 1.0 / math.sqrt(fan_in)
        w = jax.random.uniform(
            keys[2 * i], (fan_in, fan_out), jnp.float32, -bound, bound
        )
        b = jax.random.uniform(
            keys[2 * i + 1], (1, fan_out), jnp.float32, -bound, bound
        )
        params += [w, b]
    return tuple(params)


if __name__ == "__main__":
    key = jax.random.PRNGKey(0)
    pkey, xkey, xkey2 = jax.random.split(key, 3)

    params = init_params(pkey)

    # (1) PyTorch-parity path: (B, 10) f32 log-probs; batch=2, flattens to 64 features.
    x = jax.random.normal(xkey, (2, 8, 8), dtype=jnp.float32)
    out = jax.block_until_ready(simplenet_forward(x, params))
    assert out.shape == (2, NUM_CLASSES)
    row_sums = jnp.sum(jnp.exp(out), axis=-1)
    assert bool(jnp.all(jnp.abs(row_sums - 1.0) < 1e-4))
    assert bool(jnp.all(jnp.isfinite(out)))

    # (2) fused-consumer path: >= 2 grid steps (exercises v7x megacore sharding),
    #     bf16 writeback, padded slab returned without a materializing slice.
    x2 = jax.random.normal(xkey2, (48, IN_FEATURES), dtype=jnp.float32)
    out_pad = jax.block_until_ready(
        simplenet_forward(x2, params, out_dtype=jnp.bfloat16, return_padded=True))
    assert out_pad.shape[1] == PADDED_CLASSES
    logp2 = out_pad[:48, :NUM_CLASSES].astype(jnp.float32)
    row_sums2 = jnp.sum(jnp.exp(logp2), axis=-1)
    assert bool(jnp.all(jnp.abs(row_sums2 - 1.0) < 3e-2))  # bf16 log-probs ~2-3 digits

    print("KERNEL_OK")
</pallas_src>

<mosaic_0001>
module attributes {stable_mosaic.version = 11 : i64} {
  func.func @mlp_kernel(%arg0: i32, %arg1: memref<8x64xf32, #tpu.memory_space<vmem>>, %arg2: memref<64x128xbf16, #tpu.memory_space<vmem>>, %arg3: memref<1x128xf32, #tpu.memory_space<vmem>>, %arg4: memref<128x64xbf16, #tpu.memory_space<vmem>>, %arg5: memref<1x64xf32, #tpu.memory_space<vmem>>, %arg6: memref<64x128xbf16, #tpu.memory_space<vmem>>, %arg7: memref<1x128xf32, #tpu.memory_space<vmem>>, %arg8: memref<8x128xf32, #tpu.memory_space<vmem>>) attributes {dimension_semantics = [#tpu.dimension_semantics<parallel>], iteration_bounds = array<i64: 1>, scalar_prefetch = 0 : i64, scratch_operands = 0 : i64, tpu.core_type = #tpu.core_type<tc>, window_params = [{transform_indices = @transform_0, window_bounds = array<i64: 8, 64>}, {pipeline_mode = #tpu.pipeline_mode<synchronous>, transform_indices = @transform_1, window_bounds = array<i64: 64, 128>}, {pipeline_mode = #tpu.pipeline_mode<synchronous>, transform_indices = @transform_2, window_bounds = array<i64: 1, 128>}, {pipeline_mode = #tpu.pipeline_mode<synchronous>, transform_indices = @transform_3, window_bounds = array<i64: 128, 64>}, {pipeline_mode = #tpu.pipeline_mode<synchronous>, transform_indices = @transform_4, window_bounds = array<i64: 1, 64>}, {pipeline_mode = #tpu.pipeline_mode<synchronous>, transform_indices = @transform_5, window_bounds = array<i64: 64, 128>}, {pipeline_mode = #tpu.pipeline_mode<synchronous>, transform_indices = @transform_6, window_bounds = array<i64: 1, 128>}, {transform_indices = @transform_7, window_bounds = array<i64: 8, 128>}]} {
    %c0 = arith.constant 0 : index
    %c0_0 = arith.constant 0 : index
    %0 = vector.load %arg1[%c0, %c0_0] : memref<8x64xf32, #tpu.memory_space<vmem>>, vector<8x64xf32>
    %1 = arith.truncf %0 : vector<8x64xf32> to vector<8x64xbf16>
    %c0_1 = arith.constant 0 : index
    %c0_2 = arith.constant 0 : index
    %2 = vector.load %arg2[%c0_1, %c0_2] : memref<64x128xbf16, #tpu.memory_space<vmem>>, vector<64x128xbf16>
    %cst = arith.constant dense<0.000000e+00> : vector<8x128xf32>
    %3 = tpu.matmul %1, %2, %cst {dimension_numbers = #tpu.dot_dimension_numbers<[1], [0], [0], [1], [0, 0, 1, 1], [], []>} : vector<8x64xbf16>, vector<64x128xbf16>, vector<8x128xf32> -> vector<8x128xf32>
    %c0_3 = arith.constant 0 : index
    %c0_4 = arith.constant 0 : index
    %4 = vector.load %arg3[%c0_3, %c0_4] : memref<1x128xf32, #tpu.memory_space<vmem>>, vector<1x128xf32>
    %5 = vector.broadcast %4 : vector<1x128xf32> to vector<8x128xf32>
    %6 = arith.addf %3, %5 : vector<8x128xf32>
    %cst_5 = arith.constant 0.000000e+00 : f32
    %7 = vector.broadcast %cst_5 : f32 to vector<8x128xf32>
    %8 = arith.maximumf %6, %7 : vector<8x128xf32>
    %9 = arith.truncf %8 : vector<8x128xf32> to vector<8x128xbf16>
    %c0_6 = arith.constant 0 : index
    %c0_7 = arith.constant 0 : index
    %10 = vector.load %arg4[%c0_6, %c0_7] : memref<128x64xbf16, #tpu.memory_space<vmem>>, vector<128x64xbf16>
    %cst_8 = arith.constant dense<0.000000e+00> : vector<8x64xf32>
    %11 = tpu.matmul %9, %10, %cst_8 {dimension_numbers = #tpu.dot_dimension_numbers<[1], [0], [0], [1], [0, 0, 1, 1], [], []>} : vector<8x128xbf16>, vector<128x64xbf16>, vector<8x64xf32> -> vector<8x64xf32>
    %c0_9 = arith.constant 0 : index
    %c0_10 = arith.constant 0 : index
    %12 = vector.load %arg5[%c0_9, %c0_10] : memref<1x64xf32, #tpu.memory_space<vmem>>, vector<1x64xf32>
    %13 = vector.broadcast %12 : vector<1x64xf32> to vector<8x64xf32>
    %14 = arith.addf %11, %13 : vector<8x64xf32>
    %cst_11 = arith.constant 0.000000e+00 : f32
    %15 = vector.broadcast %cst_11 : f32 to vector<8x64xf32>
    %16 = arith.maximumf %14, %15 : vector<8x64xf32>
    %17 = arith.truncf %16 : vector<8x64xf32> to vector<8x64xbf16>
    %c0_12 = arith.constant 0 : index
    %c0_13 = arith.constant 0 : index
    %18 = vector.load %arg6[%c0_12, %c0_13] : memref<64x128xbf16, #tpu.memory_space<vmem>>, vector<64x128xbf16>
    %cst_14 = arith.constant dense<0.000000e+00> : vector<8x128xf32>
    %19 = tpu.matmul %17, %18, %cst_14 {dimension_numbers = #tpu.dot_dimension_numbers<[1], [0], [0], [1], [0, 0, 1, 1], [], []>} : vector<8x64xbf16>, vector<64x128xbf16>, vector<8x128xf32> -> vector<8x128xf32>
    %c0_15 = arith.constant 0 : index
    %c0_16 = arith.constant 0 : index
    %20 = vector.load %arg7[%c0_15, %c0_16] : memref<1x128xf32, #tpu.memory_space<vmem>>, vector<1x128xf32>
    %21 = vector.broadcast %20 : vector<1x128xf32> to vector<8x128xf32>
    %22 = arith.addf %19, %21 : vector<8x128xf32>
    %cst_17 = arith.constant dense<0xFF800000> : vector<8xf32>
    %23 = vector.multi_reduction <maximumf>, %22, %cst_17 [1] : vector<8x128xf32> to vector<8xf32>
    %24 = vector.shape_cast %23 : vector<8xf32> to vector<8x1xf32>
    %25 = vector.broadcast %24 : vector<8x1xf32> to vector<8x128xf32>
    %26 = arith.subf %22, %25 : vector<8x128xf32>
    %27 = math.exp %26 : vector<8x128xf32>
    %cst_18 = arith.constant dense<0.000000e+00> : vector<8xf32>
    %28 = vector.multi_reduction <add>, %27, %cst_18 [1] : vector<8x128xf32> to vector<8xf32>
    %29 = vector.shape_cast %28 : vector<8xf32> to vector<8x1xf32>
    %30 = math.log %29 : vector<8x1xf32>
    %31 = vector.broadcast %30 : vector<8x1xf32> to vector<8x128xf32>
    %32 = arith.subf %26, %31 : vector<8x128xf32>
    %c0_19 = arith.constant 0 : index
    %c0_20 = arith.constant 0 : index
    %33 = vector.load %arg8[%c0_19, %c0_20] : memref<8x128xf32, #tpu.memory_space<vmem>>, vector<8x128xf32>
    tpu.vector_store %arg8[%c0_19, %c0_20], %32 {strides = array<i32>} : memref<8x128xf32, #tpu.memory_space<vmem>>, vector<8x128xf32>,
    return
  }
  func.func @transform_0(%arg0: i32) -> (i32, i32) {
    %c0_i32 = arith.constant 0 : i32
    %c0_i32_0 = arith.constant 0 : i32
    return %arg0, %c0_i32 : i32, i32
  }
  func.func @transform_1(%arg0: i32) -> (i32, i32) {
    %c0_i32 = arith.constant 0 : i32
    %c0_i32_0 = arith.constant 0 : i32
    %c0_i32_1 = arith.constant 0 : i32
    return %c0_i32, %c0_i32_0 : i32, i32
  }
  func.func @transform_2(%arg0: i32) -> (i32, i32) {
    %c0_i32 = arith.constant 0 : i32
    %c0_i32_0 = arith.constant 0 : i32
    %c0_i32_1 = arith.constant 0 : i32
    return %c0_i32, %c0_i32_0 : i32, i32
  }
  func.func @transform_3(%arg0: i32) -> (i32, i32) {
    %c0_i32 = arith.constant 0 : i32
    %c0_i32_0 = arith.constant 0 : i32
    %c0_i32_1 = arith.constant 0 : i32
    return %c0_i32, %c0_i32_0 : i32, i32
  }
  func.func @transform_4(%arg0: i32) -> (i32, i32) {
    %c0_i32 = arith.constant 0 : i32
    %c0_i32_0 = arith.constant 0 : i32
    %c0_i32_1 = arith.constant 0 : i32
    return %c0_i32, %c0_i32_0 : i32, i32
  }
  func.func @transform_5(%arg0: i32) -> (i32, i32) {
    %c0_i32 = arith.constant 0 : i32
    %c0_i32_0 = arith.constant 0 : i32
    %c0_i32_1 = arith.constant 0 : i32
    return %c0_i32, %c0_i32_0 : i32, i32
  }
  func.func @transform_6(%arg0: i32) -> (i32, i32) {
    %c0_i32 = arith.constant 0 : i32
    %c0_i32_0 = arith.constant 0 : i32
    %c0_i32_1 = arith.constant 0 : i32
    return %c0_i32, %c0_i32_0 : i32, i32
  }
  func.func @transform_7(%arg0: i32) -> (i32, i32) {
    %c0_i32 = arith.constant 0 : i32
    %c0_i32_0 = arith.constant 0 : i32
    return %arg0, %c0_i32 : i32, i32
  }
}

</mosaic_0001>

<bundles_post_ra>
// kernel: tpu_custom_call.1
= control target key start
LH: loop header
LB: loop body
LE: loop exit
PB: predicated region body
PF: predicated region fallthrough
CT: control target
= control target key end

     0   :  { %v466_v1 = vmov 0.0   ;;  %vm467_vm0 = vmmov 0   ;;  %vm69_vm1 = vcmask 523264   ;;  %s586_s0 = inlined_call_operand.vmem [shape: f32[8,64], index: 0, kind: input, shape index: {}]   ;;  %s587_s1 = inlined_call_operand.vmem [shape: bf16[64,128], index: 1, kind: input, shape index: {}]   ;;  %s588_s2 = inlined_call_operand.vmem [shape: f32[1,128], index: 2, kind: input, shape index: {}]   ;;  %s589_s3 = inlined_call_operand.vmem [shape: bf16[128,64], index: 3, kind: input, shape index: {}]   ;;  %s590_s4 = inlined_call_operand.vmem [shape: f32[1,64], index: 4, kind: input, shape index: {}]   ;;  %s591_s5 = inlined_call_operand.vmem [shape: bf16[64,128], index: 5, kind: input, shape index: {}]   ;;  %s592_s6 = inlined_call_operand.vmem [shape: f32[1,128], index: 6, kind: input, shape index: {}]   ;;  %s593_s7 = inlined_call_operand.hbm [shape: f32[8,128], index: 7, kind: output, shape index: {}]  }
   0x1   :  { %v422_v0 = vld [vmem:[%s587_s1] sm:$0xff]   ;;  %375 = vmatprep.subr.bf16.mxu0 %v466_v1  ;;  %387 = vmatprep.subr.bf16.mxu1 %v466_v1  ;;  %v423_v2 = vld [vmem:[%s587_s1 + $0x8] sm:$0xff]   ;;  %v424_v4 = vld [vmem:[%s587_s1 + $0x10] sm:$0xff]  }
   0x2   :  { %376 = vmatpush3.bf16.msra.mxu0 %v422_v0  ;;  %383 = vmatprep.mubr.msk.bf16.mxu0 %vm467_vm0, %v466_v1  ;;  %v426_v3 = vld [vmem:[%s589_s3] sm:$0xff]   ;;  %v427_v5 = vld [vmem:[%s589_s3 + $0x8] sm:$0xff]   ;;  %v425_v6 = vld [vmem:[%s587_s1 + $0x18] sm:$0xff]  }
   0x3   :  { %377 = vmatprep.subr.bf16.mxu0 %v466_v1  ;;  %403 = vmatprep.mubr.msk.bf16.mxu1 %vm467_vm0, %v466_v1  ;;  %v28_v7 = vld [vmem:[%s586_s0] sm:$0xff]  ;;  %v428_v8 = vld [vmem:[%s589_s3 + $0x10] sm:$0xff]  }
   0x4   :  { %388 = vmatpush3.bf16.msra.mxu1 %v426_v3  ;;  %v29_v9 = vpack.c.bf16 %v28_v7, %v28_v7 }
   0x5   :  { %389 = vmatprep.subr.bf16.mxu1 %v466_v1 }
   0x6   :  { %378 = vmatpush3.bf16.msra.mxu0 %v423_v2 }
   0x7   :  { %379 = vmatprep.subr.bf16.mxu0 %v466_v1 }
   0x8   :  { %390 = vmatpush3.bf16.msra.mxu1 %v427_v5 }
   0x9   :  { %391 = vmatprep.subr.bf16.mxu1 %v466_v1 }
   0xa   :  { %380 = vmatpush3.bf16.msra.mxu0 %v424_v4 }
   0xb   :  { %381 = vmatprep.subr.bf16.mxu0 %v466_v1 }
   0xe   :  { %382 = vmatpush3.bf16.msra.mxu0 %v425_v6 }
   0xf   :  { %12 = vsyncpa [#allocation3], 0  ;;  %392 = vmatpush3.bf16.msra.mxu1 %v428_v8  ;;  %v429_v10 = vld [vmem:[%s589_s3 + $0x18] sm:$0xff]   ;;  %407 = vmatprep.subr.bf16.mxu0 %v466_v1  ;;  %v430_v11 = vld [vmem:[%s589_s3 + $0x20] sm:$0xff]  }
  0x10   :  { %393 = vmatprep.subr.bf16.mxu1 %v466_v1  ;;  %v431_v12 = vld [vmem:[%s589_s3 + $0x28] sm:$0xff]   ;;  %v432_v13 = vld [vmem:[%s589_s3 + $0x30] sm:$0xff]   ;;  %v433_v14 = vld [vmem:[%s589_s3 + $0x38] sm:$0xff]  }
  0x11   :  { %384 = vmatmul.mubr.msk.bf16.vlgmr.msra.gmra.mrb[0].mxu0 %vm69_vm1, %v29_v9  ;;  %v434_v15 = vld [vmem:[%s591_s5] sm:$0xff]   ;;  %v435_v16 = vld [vmem:[%s591_s5 + $0x8] sm:$0xff]   ;;  %v436_v25 = vld [vmem:[%s591_s5 + $0x10] sm:$0xff]  }
  0x12   :  { %415 = vmatprep.mubr.msk.bf16.mxu0 %vm467_vm0, %v466_v1  ;;  %408 = vmatpush3.bf16.msra.mxu0 %v434_v15  ;;  %v335_v17 = vld [vmem:[%s588_s2] ss:$0 sm:$0xff]  ;;  %v437_v26 = vld [vmem:[%s591_s5 + $0x18] sm:$0xff]  }
  0x13   :  { %394 = vmatpush3.bf16.msra.mxu1 %v429_v10  ;;  %409 = vmatprep.subr.bf16.mxu0 %v466_v1  ;;  %v341_v27 = vld [vmem:[%s590_s4] ss:$0 sm:$0xff]  ;;  %s468_s4 = smov [#allocation2]  }
  0x14   :  { %395 = vmatprep.subr.bf16.mxu1 %v466_v1  ;;  %v350_v35 = vld [vmem:[%s592_s6] ss:$0 sm:$0xff]  ;;  %s327_s5 = sshll.u32 %s468_s4, 4  ;;  %s328_s5 = int_to_ptr.vmem [resolvable:$true] %s327_s5 }
  0x15   :  { %s442_s6 = scalar_lea.vmem %s328_s5, 128  ;;  %p447_p1 = scmp.lt.s32.totalorder %s328_s5, %s328_s5 }
  0x16   :  { %410 = vmatpush3.bf16.msra.mxu0 %v435_v16  ;;  %p443_p0 = scmp.ne.s32.totalorder %s328_s5, %s442_s6  ;;  %p448_p2 = scmp.lt.s32.totalorder %s442_s6, %s442_s6 }
  0x17   :  { %396 = vmatpush3.bf16.msra.mxu1 %v430_v11  ;;  %411 = vmatprep.subr.bf16.mxu0 %v466_v1 }
  0x18   :  { %397 = vmatprep.subr.bf16.mxu1 %v466_v1  ;;  %p449_p3 = por %p448_p2, %p447_p1 }
  0x1a   :  { %412 = vmatpush3.bf16.msra.mxu0 %v436_v25  ;;  %p450_p4 = pnand %p449_p3, %p443_p0 }
  0x1b   :  { %398 = vmatpush3.bf16.msra.mxu1 %v431_v12  ;;  %413 = vmatprep.subr.bf16.mxu0 %v466_v1 }
  0x1c   :  { %399 = vmatprep.subr.bf16.mxu1 %v466_v1 }
  0x1e   :  { %414 = vmatpush3.bf16.msra.mxu0 %v437_v26 }
  0x1f   :  { %400 = vmatpush3.bf16.msra.mxu1 %v432_v13 }
  0x20   :  { %401 = vmatprep.subr.bf16.mxu1 %v466_v1 }
  0x23   :  { %402 = vmatpush3.bf16.msra.mxu1 %v433_v14 }
  0xe4   :  { %v107_v18 = vpop.f32.mrb[0].mxu0 }
  0xe5   :  { %v108_v19 = vadd.f32 %v335_v17, %v107_v18  ;;  %v385_v20 = vpop.f32.mrb[1].mxu0 }
  0xe6   :  { %v110_v21 = vpop.f32.mrb[2].mxu0 }
  0xe7   :  { %v113_v22 = vmax.f32 %v108_v19, 0.0  ;;  %v386_v23 = vpop.f32.mrb[3].mxu0 }
  0xe9   :  { %v114_v24 = vpack.c.bf16 %v113_v22, %v113_v22 }
  0xeb   :  { %404 = vmatmul.mubr.bf16.vlgmr.msra.gmra.mrb[0].mxu1 %v114_v24 }
 0x1be   :  { %v220_v28 = vpop.f32.mrb[0].mxu1 }
 0x1bf   :  { %v221_v29 = vadd.f32 %v341_v27, %v220_v28  ;;  %v405_v30 = vpop.f32.mrb[1].mxu1 }
 0x1c0   :  { %v223_v31 = vpop.f32.mrb[2].mxu1 }
 0x1c1   :  { %v226_v32 = vmax.f32 %v221_v29, 0.0  ;;  %v406_v33 = vpop.f32.mrb[3].mxu1 }
 0x1c3   :  { %v227_v34 = vpack.c.bf16 %v226_v32, %v226_v32 }
 0x1c5   :  { %416 = vmatmul.mubr.msk.bf16.vlgmr.msra.gmra.mrb[4].mxu0 %vm69_vm1, %v227_v34 }
 0x298   :  { %v304_v36 = vpop.f32.mrb[4].mxu0 }
 0x299   :  { %v305_v37 = vadd.f32 %v350_v35, %v304_v36  ;;  %v417_v38 = vpop.f32.mrb[5].mxu0 }
 0x29a   :  { %v307_v39 = vpop.f32.mrb[6].mxu0 }
 0x29b   :  { %310 = vmax.xlane.f32.xlu0 %v305_v37  ;;  %v418_v40 = vpop.f32.mrb[7].mxu0 }
 0x328   :  { %v311_v41 = vpop.xlane.xlu0 %310 }
 0x329   :  { %v312_v42 = vsub.f32 %v305_v37, %v311_v41 }
 0x32b   :  { %v313_v43 = vmul.f32 1.442695, %v312_v42 }
 0x32d   :  { %438 = vpow2.f32 %v313_v43 }
 0x337   :  { %v439_v44 = vpop.eup %438 }
 0x338   :  { %315 = vadd.xlane.f32.xlu0 %v439_v44 }
 0x3c5   :  { %v316_v45 = vpop.xlane.xlu0 %315 }
 0x3c6   :  { %440 = vlog2.f32 %v316_v45 }
 0x3d0   :  { %v441_v46 = vpop.eup %440 }
 0x3d1   :  { %v318_v47 = vmul.f32 0.6931472, %v441_v46 }
 0x3d3   :  { %v319_v48 = vsub.f32 %v312_v42, %v318_v47 }
 0x3d5   :  { %320 = vst [vmem:[#allocation2] sm:$0xff] %v319_v48 }
 0x3d6   :  { %453 = shalt.err (!%p450_p4)
}
 0x3d7   :  { %s454_s16 = scalar_lea.hbm %s593_s7, 128 }
 0x3d8   :  { %p455_p5 = scmp.ne.s32.totalorder %s593_s7, %s454_s16  ;;  %p458_p6 = scmp.lt.u32.totalorder %s454_s16, %s593_s7 }
 0x3da   :  { %p460_p7 = pnand %p458_p6, %p455_p5 }
 0x3dc   :  { %463 = shalt.err (!%p460_p7)
}
 0x3dd   :  { %330 = dma.vmem_to_hbm [thread:$0]  %s328_s5, 128, %s593_s7, [#allocation3]  }
 0x3de   :  { %464 = dma.done.wait [#allocation3], 128  }
 0x3df   :  { %465 = vsyncadd [#allocation3], 4294967168 }
 0x3e0   :  { %334 = vsyncpa [#allocation3], 1 }

</bundles_post_ra>
